<compile_context>
chip_gen: v6e
topology: v6e:2x2x1
jax: 0.10.0
libtpu: 0.0.40
codegen_flags: <defaults>
</compile_context>

<pallas_src>
import functools

import jax
import jax.numpy as jnp
from jax.experimental import pallas as pl
from jax.experimental.pallas import tpu as pltpu

EPS = 1e-08
_MIB = 1024 * 1024


# ---------------------------------------------------------------------------
# Generation-aware VMEM budgets.
# ---------------------------------------------------------------------------
@functools.lru_cache(maxsize=1)
def _budgets():
    phys = 64 * _MIB  # conservative fallback (v7x-sized)
    try:
        info = pltpu.get_tpu_info()
        phys = int(getattr(info, "vmem_capacity_bytes", phys) or phys)
    except Exception:
        pass
    if phys >= 128 * _MIB:
        # v5e / v6e: 128 MiB physical VMEM per TensorCore.
        return {"vmem_cap": 110 * _MIB, "fused_budget": 100 * _MIB, "tile_f32": 8 * _MIB}
    # v7x: 64 MiB physical; leave headroom for compiler scratch / semaphores.
    return {"vmem_cap": 52 * _MIB, "fused_budget": 40 * _MIB, "tile_f32": 5 * _MIB}


def _clamp_vmem(need, cap):
    return int(min(max(need, 16 * _MIB), cap))


# ---------------------------------------------------------------------------
# Fused single-pass kernel: whole (MB, N, K) slab per grid step.
# ---------------------------------------------------------------------------
def _gln_fused_kernel(y_ref, gamma_ref, beta_ref, o_ref):
    # y_ref: (MB, N, K); gamma_ref / beta_ref: (1, N, 1)
    y = y_ref[...].astype(jnp.float32)
    inv_cnt = 1.0 / (y.shape[1] * y.shape[2])

    # Pass 1 over the resident slab: mean.  Sublane (N) reduce first on the VPU,
    # single lane (K) reduce after.
    row = jnp.sum(y, axis=1, keepdims=True)                 # (MB, 1, K)
    mean = jnp.sum(row, axis=2, keepdims=True) * inv_cnt    # (MB, 1, 1)

    # Pass 2 over the resident slab: true two-pass variance (HBM-free; VPU has slack).
    d = y - mean
    row2 = jnp.sum(d * d, axis=1, keepdims=True)            # (MB, 1, K)
    var = jnp.sum(row2, axis=2, keepdims=True) * inv_cnt    # (MB, 1, 1)
    rstd = jax.lax.rsqrt(var + EPS)

    scale = gamma_ref[...].astype(jnp.float32) * rstd              # (MB, N, 1)
    shift = beta_ref[...].astype(jnp.float32) - mean * scale       # (MB, N, 1)
    o_ref[...] = (y * scale + shift).astype(o_ref.dtype)


# ---------------------------------------------------------------------------
# K-tiled two-pass fallback: stats pass (with in-kernel finalize) + normalize pass.
# ---------------------------------------------------------------------------
def _make_stats_kernel(N, K, tk):
    nk = pl.cdiv(K, tk)
    inv_cnt = 1.0 / (N * K)

    def kernel(y_ref, mean_ref, rstd_ref):
        # y_ref: (1, N, tk); mean_ref / rstd_ref: (1, 1, 1) resident across k.
        k = pl.program_id(1)
        y = y_ref[...].astype(jnp.float32)
        # Mask the (possibly partial) last K tile: OOB reads are unspecified.
        lane = jax.lax.broadcasted_iota(jnp.int32, y.shape, 2)
        y = jnp.where(k * tk + lane < K, y, 0.0)

        row = jnp.sum(y, axis=1, keepdims=True)             # (1, 1, tk)
        row2 = jnp.sum(y * y, axis=1, keepdims=True)        # (1, 1, tk)
        s = jnp.sum(row, axis=2, keepdims=True)             # (1, 1, 1)
        ss = jnp.sum(row2, axis=2, keepdims=True)           # (1, 1, 1)

        @pl.when(k == 0)
        def _():
            mean_ref[...] = s
            rstd_ref[...] = ss

        @pl.when(k > 0)
        def _():
            mean_ref[...] += s
            rstd_ref[...] += ss

        @pl.when(k == nk - 1)
        def _():
            mean = mean_ref[...] * inv_cnt
            # One-pass formula is forced here (single read of the data); clamp guards
            # the E[y^2] - mean^2 cancellation.
            var = jnp.maximum(rstd_ref[...] * inv_cnt - mean * mean, 0.0)
            mean_ref[...] = mean
            rstd_ref[...] = jax.lax.rsqrt(var + EPS)

    return kernel


def _gln_norm_kernel(y_ref, gamma_ref, beta_ref, mean_ref, rstd_ref, o_ref):
    # y_ref: (1, N, tk); gamma/beta: (1, N, 1); mean/rstd: (1, 1, 1).
    y = y_ref[...].astype(jnp.float32)
    scale = gamma_ref[...].astype(jnp.float32) * rstd_ref[...]      # (1, N, 1)
    shift = beta_ref[...].astype(jnp.float32) - mean_ref[...] * scale
    o_ref[...] = (y * scale + shift).astype(o_ref.dtype)


# ---------------------------------------------------------------------------
# VMEM sizing / tiling helpers.
# ---------------------------------------------------------------------------
def _fused_vmem_need(mb, N, K, itemsize):
    blk = mb * N * K
    need = 2 * blk * itemsize               # double-buffered input block
    need += 2 * blk * itemsize              # double-buffered output block
    need += (1 if itemsize == 4 else 2) * blk * 4   # f32 temporaries (diff / f32 copy)
    n_pad = -(-N // 8) * 8
    need += 4 * n_pad * 128 * 4             # gamma + beta blocks, lane-padded, double-buffered
    return need + 2 * _MIB                  # compiler slack


def _pick_mb(M, N, K, itemsize, fused_budget):
    """Largest divisor of M within budget, keeping >= 4 grid steps when M allows
    (>= 2 per TensorCore on v7x so each core still double-buffers)."""
    min_steps = 4 if M >= 4 else (2 if M >= 2 else 1)
    mb = 1
    for cand in range(1, M + 1):
        if M % cand:
            continue
        if M // cand < min_steps:
            continue
        if _fused_vmem_need(cand, N, K, itemsize) <= fused_budget:
            mb = cand
    return mb


def _choose_tk(N, K, tile_f32_bytes):
    """Largest multiple of 128 keeping N*tk f32 near the target tile size.
    K need not be divisible by tk (masked tail in the stats pass)."""
    if K <= 256:
        return K                              # full array dim -> always a legal block
    per_lane_group = N * 128 * 4
    t = max(1, tile_f32_bytes // per_lane_group)
    tk = 128 * t
    tk = min(tk, (K // 128) * 128)            # never larger than the array dim
    return max(tk, 128)


# ---------------------------------------------------------------------------
# Paths.
# ---------------------------------------------------------------------------
def _gln_fused(y, gamma, beta):
    M, N, K = y.shape
    b = _budgets()
    itemsize = jnp.dtype(y.dtype).itemsize
    mb = _pick_mb(M, N, K, itemsize, b["fused_budget"])
    vmem_limit = _clamp_vmem(_fused_vmem_need(mb, N, K, itemsize), b["vmem_cap"])
    return pl.pallas_call(
        _gln_fused_kernel,
        out_shape=jax.ShapeDtypeStruct((M, N, K), y.dtype),
        grid=(M // mb,),
        in_specs=[
            pl.BlockSpec((mb, N, K), lambda m: (m, 0, 0)),
            pl.BlockSpec((1, N, 1), lambda m: (0, 0, 0)),
            pl.BlockSpec((1, N, 1), lambda m: (0, 0, 0)),
        ],
        out_specs=pl.BlockSpec((mb, N, K), lambda m: (m, 0, 0)),
        compiler_params=pltpu.CompilerParams(
            dimension_semantics=("parallel",),
            vmem_limit_bytes=vmem_limit,
        ),
    )(y, gamma, beta)


def _gln_tiled(y, gamma, beta, tk):
    M, N, K = y.shape
    b = _budgets()
    itemsize = jnp.dtype(y.dtype).itemsize
    nk = pl.cdiv(K, tk)
    blk = N * tk

    # Pass 1: per-batch sum / sum-of-squares accumulated over K tiles, finalized
    # in-kernel to mean / rstd at the last k step (no interstitial XLA dispatch).
    # TODO(synk): for M < 2 * num_cores on v7x, split K across a leading 'parallel'
    # axis (partial sums combined afterwards) so both TensorCores work on this pass.
    stats_vmem = _clamp_vmem(
        2 * blk * itemsize + 2 * blk * 4 + 4 * 8 * 128 * 4 + 2 * _MIB, b["vmem_cap"]
    )
    mean, rstd = pl.pallas_call(
        _make_stats_kernel(N, K, tk),
        out_shape=(
            jax.ShapeDtypeStruct((M, 1, 1), jnp.float32),
            jax.ShapeDtypeStruct((M, 1, 1), jnp.float32),
        ),
        grid=(M, nk),
        in_specs=[pl.BlockSpec((1, N, tk), lambda m, k: (m, 0, k))],
        out_specs=(
            pl.BlockSpec((1, 1, 1), lambda m, k: (m, 0, 0)),
            pl.BlockSpec((1, 1, 1), lambda m, k: (m, 0, 0)),
        ),
        compiler_params=pltpu.CompilerParams(
            dimension_semantics=("parallel", "arbitrary"),
            vmem_limit_bytes=stats_vmem,
        ),
    )(y)

    # Pass 2: single FMA pass over the data; gamma/beta/mean/rstd folded in-kernel.
    norm_vmem = _clamp_vmem(
        4 * blk * itemsize + 2 * blk * 4 + 8 * (-(-N // 8) * 8) * 128 * 4 + 2 * _MIB,
        b["vmem_cap"],
    )
    return pl.pallas_call(
        _gln_norm_kernel,
        out_shape=jax.ShapeDtypeStruct((M, N, K), y.dtype),
        grid=(M, nk),
        in_specs=[
            pl.BlockSpec((1, N, tk), lambda m, k: (m, 0, k)),
            pl.BlockSpec((1, N, 1), lambda m, k: (0, 0, 0)),
            pl.BlockSpec((1, N, 1), lambda m, k: (0, 0, 0)),
            pl.BlockSpec((1, 1, 1), lambda m, k: (m, 0, 0)),
            pl.BlockSpec((1, 1, 1), lambda m, k: (m, 0, 0)),
        ],
        out_specs=pl.BlockSpec((1, N, tk), lambda m, k: (m, 0, k)),
        compiler_params=pltpu.CompilerParams(
            dimension_semantics=("parallel", "parallel"),
            vmem_limit_bytes=norm_vmem,
        ),
    )(y, gamma, beta, mean, rstd)


def global_layer_norm(y, gamma, beta, *, force_tiled=False):
    """y: [M, N, K]; gamma, beta: [1, N, 1]. Returns gLN(y) with y's dtype."""
    M, N, K = y.shape
    b = _budgets()
    itemsize = jnp.dtype(y.dtype).itemsize
    single_need = _fused_vmem_need(1, N, K, itemsize)
    if force_tiled or single_need > b["fused_budget"]:
        # TODO(synk): if a single (1, N, tk=128) tile still exceeds VMEM (enormous N),
        # an additional N-tiled stats pass would be needed.
        return _gln_tiled(y, gamma, beta, _choose_tk(N, K, b["tile_f32"]))
    return _gln_fused(y, gamma, beta)


# ---------------------------------------------------------------------------
# Pure-JAX reference mirroring the PyTorch forward exactly.
# ---------------------------------------------------------------------------
def global_layer_norm_ref(y, gamma, beta):
    mean = jnp.mean(jnp.mean(y, axis=1, keepdims=True), axis=2, keepdims=True)
    var = jnp.mean(
        jnp.mean((y - mean) ** 2, axis=1, keepdims=True), axis=2, keepdims=True
    )
    return gamma * (y - mean) / jnp.power(var + EPS, 0.5) + beta


if __name__ == "__main__":
    def _check(M, N, K, force_tiled, key):
        ky, kg, kb = jax.random.split(key, 3)
        y = jax.random.normal(ky, (M, N, K), dtype=jnp.float32)
        gamma = 1.0 + 0.1 * jax.random.normal(kg, (1, N, 1), dtype=jnp.float32)
        beta = 0.1 * jax.random.normal(kb, (1, N, 1), dtype=jnp.float32)

        out = jax.block_until_ready(
            global_layer_norm(y, gamma, beta, force_tiled=force_tiled)
        )
        ref = global_layer_norm_ref(y, gamma, beta)
        assert out.shape == (M, N, K)
        err = jnp.max(jnp.abs(out - ref))
        assert err < 2e-5, f"mismatch vs reference ({M},{N},{K},tiled={force_tiled}): {err}"

    key = jax.random.PRNGKey(0)
    k1, k2, k3, k4 = jax.random.split(key, 4)

    # Fused path (batch=2, channels=16, length=256).
    _check(2, 16, 256, force_tiled=False, key=k1)
    # Fused path with MB > 1 batching while keeping >= 4 grid steps (batch=8).
    _check(8, 8, 128, force_tiled=False, key=k2)
    # K-tiled two-pass fallback path (K a multiple of the tile).
    _check(2, 16, 256, force_tiled=True, key=k3)
    # K-tiled fallback with K not a multiple of 128 (exercises the masked tail).
    _check(2, 16, 300, force_tiled=True, key=k4)

    print("KERNEL_OK")
</pallas_src>

<mosaic_0001>
module attributes {stable_mosaic.version = 11 : i64} {
  func.func @_gln_fused_kernel(%arg0: i32, %arg1: memref<1x16x256xf32, #tpu.memory_space<vmem>>, %arg2: memref<1x16x1xf32, #tpu.memory_space<vmem>>, %arg3: memref<1x16x1xf32, #tpu.memory_space<vmem>>, %arg4: memref<1x16x256xf32, #tpu.memory_space<vmem>>) attributes {dimension_semantics = [#tpu.dimension_semantics<parallel>], iteration_bounds = array<i64: 2>, scalar_prefetch = 0 : i64, scratch_operands = 0 : i64, tpu.core_type = #tpu.core_type<tc>, window_params = [{transform_indices = @transform_0, window_bounds = array<i64: 1, 16, 256>}, {pipeline_mode = #tpu.pipeline_mode<synchronous>, transform_indices = @transform_1, window_bounds = array<i64: 1, 16, 1>}, {pipeline_mode = #tpu.pipeline_mode<synchronous>, transform_indices = @transform_2, window_bounds = array<i64: 1, 16, 1>}, {transform_indices = @transform_3, window_bounds = array<i64: 1, 16, 256>}]} {
    %c0 = arith.constant 0 : index
    %c0_0 = arith.constant 0 : index
    %c0_1 = arith.constant 0 : index
    %0 = vector.load %arg1[%c0, %c0_0, %c0_1] : memref<1x16x256xf32, #tpu.memory_space<vmem>>, vector<1x16x256xf32>
    %cst = arith.constant dense<0.000000e+00> : vector<1x256xf32>
    %1 = vector.multi_reduction <add>, %0, %cst [1] : vector<1x16x256xf32> to vector<1x256xf32>
    %2 = vector.shape_cast %1 : vector<1x256xf32> to vector<1x1x256xf32>
    %cst_2 = arith.constant dense<0.000000e+00> : vector<1x1xf32>
    %3 = vector.multi_reduction <add>, %2, %cst_2 [2] : vector<1x1x256xf32> to vector<1x1xf32>
    %4 = vector.shape_cast %3 : vector<1x1xf32> to vector<1x1x1xf32>
    %cst_3 = arith.constant 2.44140625E-4 : f32
    %5 = vector.broadcast %cst_3 : f32 to vector<1x1x1xf32>
    %6 = arith.mulf %4, %5 : vector<1x1x1xf32>
    %7 = vector.broadcast %6 : vector<1x1x1xf32> to vector<1x16x256xf32>
    %8 = arith.subf %0, %7 : vector<1x16x256xf32>
    %9 = arith.mulf %8, %8 : vector<1x16x256xf32>
    %cst_4 = arith.constant dense<0.000000e+00> : vector<1x256xf32>
    %10 = vector.multi_reduction <add>, %9, %cst_4 [1] : vector<1x16x256xf32> to vector<1x256xf32>
    %11 = vector.shape_cast %10 : vector<1x256xf32> to vector<1x1x256xf32>
    %cst_5 = arith.constant dense<0.000000e+00> : vector<1x1xf32>
    %12 = vector.multi_reduction <add>, %11, %cst_5 [2] : vector<1x1x256xf32> to vector<1x1xf32>
    %13 = vector.shape_cast %12 : vector<1x1xf32> to vector<1x1x1xf32>
    %cst_6 = arith.constant 2.44140625E-4 : f32
    %14 = vector.broadcast %cst_6 : f32 to vector<1x1x1xf32>
    %15 = arith.mulf %13, %14 : vector<1x1x1xf32>
    %cst_7 = arith.constant 9.99999993E-9 : f32
    %16 = vector.broadcast %cst_7 : f32 to vector<1x1x1xf32>
    %17 = arith.addf %15, %16 : vector<1x1x1xf32>
    %18 = math.rsqrt %17 : vector<1x1x1xf32>
    %c0_8 = arith.constant 0 : index
    %c0_9 = arith.constant 0 : index
    %c0_10 = arith.constant 0 : index
    %19 = vector.load %arg2[%c0_8, %c0_9, %c0_10] : memref<1x16x1xf32, #tpu.memory_space<vmem>>, vector<1x16x1xf32>
    %20 = vector.broadcast %18 : vector<1x1x1xf32> to vector<1x16x1xf32>
    %21 = arith.mulf %19, %20 : vector<1x16x1xf32>
    %c0_11 = arith.constant 0 : index
    %c0_12 = arith.constant 0 : index
    %c0_13 = arith.constant 0 : index
    %22 = vector.load %arg3[%c0_11, %c0_12, %c0_13] : memref<1x16x1xf32, #tpu.memory_space<vmem>>, vector<1x16x1xf32>
    %23 = vector.broadcast %6 : vector<1x1x1xf32> to vector<1x16x1xf32>
    %24 = arith.mulf %23, %21 : vector<1x16x1xf32>
    %25 = arith.subf %22, %24 : vector<1x16x1xf32>
    %26 = vector.broadcast %21 : vector<1x16x1xf32> to vector<1x16x256xf32>
    %27 = arith.mulf %0, %26 : vector<1x16x256xf32>
    %28 = vector.broadcast %25 : vector<1x16x1xf32> to vector<1x16x256xf32>
    %29 = arith.addf %27, %28 : vector<1x16x256xf32>
    %c0_14 = arith.constant 0 : index
    %c0_15 = arith.constant 0 : index
    %c0_16 = arith.constant 0 : index
    %30 = vector.load %arg4[%c0_14, %c0_15, %c0_16] : memref<1x16x256xf32, #tpu.memory_space<vmem>>, vector<1x16x256xf32>
    tpu.vector_store %arg4[%c0_14, %c0_15, %c0_16], %29 {strides = array<i32>} : memref<1x16x256xf32, #tpu.memory_space<vmem>>, vector<1x16x256xf32>,
    return
  }
  func.func @transform_0(%arg0: i32) -> (i32, i32, i32) {
    %c0_i32 = arith.constant 0 : i32
    %c0_i32_0 = arith.constant 0 : i32
    %c0_i32_1 = arith.constant 0 : i32
    return %arg0, %c0_i32, %c0_i32_0 : i32, i32, i32
  }
  func.func @transform_1(%arg0: i32) -> (i32, i32, i32) {
    %c0_i32 = arith.constant 0 : i32
    %c0_i32_0 = arith.constant 0 : i32
    %c0_i32_1 = arith.constant 0 : i32
    %c0_i32_2 = arith.constant 0 : i32
    return %c0_i32, %c0_i32_0, %c0_i32_1 : i32, i32, i32
  }
  func.func @transform_2(%arg0: i32) -> (i32, i32, i32) {
    %c0_i32 = arith.constant 0 : i32
    %c0_i32_0 = arith.constant 0 : i32
    %c0_i32_1 = arith.constant 0 : i32
    %c0_i32_2 = arith.constant 0 : i32
    return %c0_i32, %c0_i32_0, %c0_i32_1 : i32, i32, i32
  }
  func.func @transform_3(%arg0: i32) -> (i32, i32, i32) {
    %c0_i32 = arith.constant 0 : i32
    %c0_i32_0 = arith.constant 0 : i32
    %c0_i32_1 = arith.constant 0 : i32
    return %arg0, %c0_i32, %c0_i32_0 : i32, i32, i32
  }
}

</mosaic_0001>

<bundles_post_ra>
// kernel: tpu_custom_call.1
= control target key start
LH: loop header
LB: loop body
LE: loop exit
PB: predicated region body
PF: predicated region fallthrough
CT: control target
= control target key end

     0   :  { %8 = vsyncpa [#allocation3], 0  ;;  %s750_s0 = inlined_call_operand.hbm [shape: f32[2,16,256], index: 0, kind: input, shape index: {}]   ;;  %s751_s1 = inlined_call_operand.vmem [shape: f32[1,16,1], index: 1, kind: input, shape index: {}]   ;;  %s752_s2 = inlined_call_operand.vmem [shape: f32[1,16,1], index: 2, kind: input, shape index: {}]   ;;  %s753_s3 = inlined_call_operand.hbm [shape: f32[2,16,256], index: 3, kind: output, shape index: {}]  }
   0x1   :  { %10 = vsyncpa [#allocation3 + $0x1], 0 }
   0x2   :  { %11 = vsyncpa [#allocation4], 0 }
   0x3   :  { %13 = vsyncpa [#allocation4 + $0x1], 0  ;;  %s560_s12 = smov 0   ;;  %s562_s13 = smov 0  }
   0x4   :  { %s564_s14 = smov 0   ;;  %s566_s15 = smov 0  }
   0x5 LB: > { %s581_s16 = sadd.s32 4294967295, %s531_s15   ;;  %s368_s17 = sadd.s32 4294967294, %s531_s15   ;;  %s531_s15 = sphi %s566_s15, %s768_s15   ;;  %s527_s14 = sphi %s564_s14, %s767_s14   ;;  %s523_s13 = sphi %s562_s13, %s766_s13   ;;  %s519_s12 = sphi %s560_s12, %s765_s12  }
   0x6   : > { %s585_s18 = sadd.s32 1, %s531_s15   ;;  %s26_s19 = sadd.s32 1, %s527_s14 }
   0x7   : > { %s23_s20 = ssub.s32 %s531_s15, %s585_s18  ;;  %p33_p0 = scmp.ne.s32.totalorder %s527_s14, %s523_s13 }
   0x8   : > { %p24_p1 = scmp.eq.s32.totalorder %s23_s20, 0  ;;  %p34_p2 = scmp.eq.s32.totalorder %s531_s15, 0 }
   0x9   : > { %p39_p3 = scmp.ne.s32.totalorder %s523_s13, %s519_s12  ;;  %p40_p4 = scmp.eq.s32.totalorder %s581_s16, 0 }
   0xa   : > { %s597_s21 = scalar_select %p24_p1, %s527_s14, %s26_s19  }
   0xb   : > { %p599_p5 = por %p34_p2, %p33_p0  ;;  %p603_p6 = por %p40_p4, %p39_p3 }
   0xc   : > { %p105_p7 = scmp.eq.s32.totalorder %s581_s16, 1  ;;  %p111_p8 = scmp.eq.s32.totalorder %s368_s17, 1 }
   0xd   : > { %s757_s23 = scalar_select %p603_p6, 1, 0 }
   0xe   : > { %p396_p10 = scmp.lt.s32.totalorder %s531_s15, 2  ;;  %p610_p11 = por %p105_p7, %p33_p0 }
   0xf   : > { %p614_p12 = por %p111_p8, %p39_p3  ;;  %s137_s26 = sand.u32 1, %s527_s14  }
  0x10   : > { %s758_s24 = scalar_select %p610_p11, 1, 0 }
  0x11   : > { %s759_s25 = scalar_select %p614_p12, 1, 0 }
  0x12   : > { %s382_s27 = sshll.u32 %s531_s15, 9  ;;  %s371_s28 = sshll.u32 %s137_s26, 5 }
  0x13   : > { %s623_s4 = scalar_lea.hbm %s750_s0, %s382_s27  ;;  %s141_s5 = scalar_lea.vmem [#allocation2], %s371_s28 }
  0x14   : > { %s148_s6 = sshll.u32 %s141_s5, 4  ;;  %p627_p13 = pnand %p396_p10, %p599_p5  ;;  %s631_s6 = int_to_ptr.vmem [resolvable:$true] %s148_s6 }
  0x15   : > { %s633_s8 = scalar_lea.sflag [#allocation3], %s137_s26  ;;  %s439_s9 = scalar_lea.hbm %s623_s4, 512 }
  0x16   : > { %p440_p0 = scmp.ne.s32.totalorder %s623_s4, %s439_s9  ;;  %p441_p1 = pneg %p627_p13 }
  0x17   : > { %s444_s17 = scalar_lea.hbm %s750_s0, 1024  ;;  %p445_p4 = scmp.lt.s32.totalorder %s623_s4, %s750_s0 }
  0x18   : > { %p442_p2 = pnand %p441_p1, %p440_p0  ;;  %p446_p5 = scmp.lt.s32.totalorder %s444_s17, %s439_s9 }
  0x1a   : > { %p443_p3 = pneg %p442_p2  ;;  %p447_p7 = por %p446_p5, %p445_p4 }
  0x1c   : > { %p448_p8 = pnand %p447_p7, %p443_p3 }
  0x1e   : > { %451 = shalt.err (!%p448_p8)
}
  0x1f   : > { %s452_s22 = scalar_lea.vmem %s631_s6, 512  ;;  %s533_s26 = smov [#allocation2]  }
  0x20   : > { %p453_p10 = scmp.ne.s32.totalorder %s631_s6, %s452_s22  ;;  %s457_s27 = sshll.u32 %s533_s26, 4  ;;  %s458_s27 = int_to_ptr.vmem [resolvable:$false] %s457_s27 }
  0x21   : > { %s459_s28 = scalar_lea.vmem %s458_s27, 1024  ;;  %p460_p2 = scmp.lt.s32.totalorder %s631_s6, %s458_s27 }
  0x22   : > { %p455_p9 = pnand %p453_p10, %p441_p1  ;;  %p461_p12 = scmp.lt.s32.totalorder %s459_s28, %s452_s22 }
  0x24   : > { %p456_p0 = pneg %p455_p9  ;;  %p462_p11 = por %p461_p12, %p460_p2 }
  0x26   : > { %p463_p6 = pnand %p462_p11, %p456_p0 }
  0x28   : > { %466 = shalt.err (!%p463_p6)
}
  0x29   : > { %s534_s29 = smov 256   ;;  %s535_s30 = smov 16  }
  0x2a   : > { %391 = dma.hbm_to_vmem [thread:$0]  (!%p627_p13), %s623_s4, 512, %s631_s6, %s633_s8, %s534_s29, %s534_s29, %s535_s30  }
  0x2b   : > { %p374_p9 = scmp.ge.s32.totalorder %s531_s15, 1  ;;  %p156_p1 = scmp.lt.s32.totalorder %s531_s15, 3 }
  0x2d   : > { %p157_p3 = pnand %p374_p9, %p156_p1 }
  0x2e   : > { %s657_s5 = sand.u32 (!%p157_p3), 1, %s523_s13   ;;  %p761_p6 = scmp.ne.s32.totalorder (!%p157_p3), %s757_s23, 0 }
  0x2f   : > { %160 = sbr.rel (%p157_p3) target bundleno = 537 (0x219), region = 32  ;;  %s375_s9 = sshll.u32 (!%p157_p3), %s657_s5, 5 }
  0x30   : > { %s163_s10 = scalar_lea.sflag (!%p157_p3), [#allocation3], %s657_s5  ;;  %s166_s11 = scalar_lea.vmem (!%p157_p3), [#allocation2], %s375_s9 }
  0x34   : > { %510 = dma.done.wait (%p761_p6), %s163_s10, 512  }
  0x35   : > { %512 = vsyncadd (%p761_p6), %s163_s10, 4294966784  ;;  %v667_v0 = vld [vmem:[%s166_s11] sm:$0xff]  ;;  %v669_v1 = vld [vmem:[%s166_s11 + $0x8] sm:$0xff]  ;;  %v536_v44 = vmov 0   ;;  %s188_s22 = scalar_lea.vmem [#allocation5], %s375_s9  ;;  %s383_s27 = sshll.u32 %s581_s16, 9 }
  0x36   : > { %v671_v2 = vld [vmem:[%s166_s11 + $0x10] sm:$0xff]  ;;  %v673_v3 = vld [vmem:[%s166_s11 + $0x18] sm:$0xff]  ;;  %435 = vset.pattern.permute.xlu1 %v536_v44  ;;  %436 = vset.pattern.permute.xlu0 %v536_v44  ;;  %v239_v48 = vld [vmem:[%s751_s1] sm:$0xff]  ;;  %s295_s26 = sshll.u32 %s188_s22, 4  ;;  %s707_s30 = scalar_lea.hbm %s753_s3, %s383_s27  ;;  %s702_s26 = int_to_ptr.vmem [resolvable:$true] %s295_s26 }
  0x37   : > { %v193_v4 = vadd.f32 %v671_v2, %v667_v0  ;;  %v200_v5 = vadd.f32 %v673_v3, %v669_v1  ;;  %v240_v49 = vld [vmem:[%s751_s1 + $0x8] sm:$0xff]  ;;  %v243_v53 = vld [vmem:[%s752_s2] sm:$0xff]  ;;  %s282_s16 = scalar_lea.sflag [#allocation4], %s657_s5  ;;  %s467_s9 = scalar_lea.vmem %s702_s26, 512 }
  0x38   : > { %v244_v57 = vld [vmem:[%s752_s2 + $0x8] sm:$0xff]  ;;  %p468_p11 = scmp.ne.s32.totalorder %s702_s26, %s467_s9  ;;  %p762_p12 = scmp.ne.s32.totalorder %s758_s24, 0 }
  0x39   : > { %v194_v6 = vrot.slane %v193_v4, 4  ;;  %v201_v7 = vrot.slane %v200_v5, 4  ;;  %s537_s10 = smov [#allocation5]  }
  0x3a   : > { %p469_p13 = pnand %p468_p11, %p762_p12  ;;  %s471_s11 = sshll.u32 %s537_s10, 4  ;;  %s472_s11 = int_to_ptr.vmem [resolvable:$false] %s471_s11 }
  0x3b   : > { %v195_v8 = vadd.f32 %v194_v6, %v193_v4  ;;  %v202_v9 = vadd.f32 %v201_v7, %v200_v5  ;;  %s473_s23 = scalar_lea.vmem %s472_s11, 1024  ;;  %p474_p5 = scmp.lt.s32.totalorder %s702_s26, %s472_s11 }
  0x3c   : > { %p470_p4 = pneg %p469_p13  ;;  %p475_p7 = scmp.lt.s32.totalorder %s473_s23, %s467_s9 }
  0x3d   : > { %v196_v10 = vrot.slane %v195_v8, 2  ;;  %v203_v11 = vrot.slane %v202_v9, 2 }
  0x3e   : > { %p476_p8 = por %p475_p7, %p474_p5 }
  0x3f   : > { %v197_v12 = vadd.f32 %v196_v10, %v195_v8  ;;  %v204_v13 = vadd.f32 %v203_v11, %v202_v9 }
  0x40   : > { %p477_p10 = pnand %p476_p8, %p470_p4 }
  0x41   : > { %v198_v14 = vrot.slane %v197_v12, 1  ;;  %v205_v15 = vrot.slane %v204_v13, 1 }
  0x43   : > { %v199_v16 = vadd.f32 %v198_v14, %v197_v12  ;;  %v206_v17 = vadd.f32 %v205_v15, %v204_v13 }
  0x45   : > { %v207_v18 = vadd.f32 %v206_v17, %v199_v16 }
  0x47   : > { %208 = vadd.xlane.f32.xlu0 %v207_v18 }
  0xd0   : > { %v209_v19 = vpop.xlane.xlu0 %208 }
  0xd1   : > { %v210_v20 = vmul.f32 0.00024414063, %v209_v19 }
  0xd3   : > { %v211_v21 = vsub.f32 %v667_v0, %v210_v20  ;;  %v212_v22 = vsub.f32 %v669_v1, %v210_v20  ;;  %v213_v23 = vsub.f32 %v671_v2, %v210_v20  ;;  %v214_v24 = vsub.f32 %v673_v3, %v210_v20 }
  0xd5   : > { %v215_v25 = vmul.f32 %v211_v21, %v211_v21  ;;  %v216_v26 = vmul.f32 %v212_v22, %v212_v22  ;;  %v217_v27 = vmul.f32 %v213_v23, %v213_v23  ;;  %v218_v28 = vmul.f32 %v214_v24, %v214_v24 }
  0xd7   : > { %v219_v29 = vadd.f32 %v217_v27, %v215_v25  ;;  %v226_v30 = vadd.f32 %v218_v28, %v216_v26 }
  0xd9   : > { %v220_v31 = vrot.slane %v219_v29, 4  ;;  %v227_v32 = vrot.slane %v226_v30, 4 }
  0xdb   : > { %v221_v33 = vadd.f32 %v220_v31, %v219_v29  ;;  %v228_v34 = vadd.f32 %v227_v32, %v226_v30 }
  0xdd   : > { %v222_v35 = vrot.slane %v221_v33, 2  ;;  %v229_v36 = vrot.slane %v228_v34, 2 }
  0xdf   : > { %v223_v37 = vadd.f32 %v222_v35, %v221_v33  ;;  %v230_v38 = vadd.f32 %v229_v36, %v228_v34 }
  0xe1   : > { %v224_v39 = vrot.slane %v223_v37, 1  ;;  %v231_v40 = vrot.slane %v230_v38, 1 }
  0xe3   : > { %v225_v41 = vadd.f32 %v224_v39, %v223_v37  ;;  %v232_v42 = vadd.f32 %v231_v40, %v230_v38 }
  0xe5   : > { %v233_v43 = vadd.f32 %v232_v42, %v225_v41 }
  0xe7   : > { %234 = vadd.xlane.f32.xlu0 %v233_v43 }
 0x170   : > { %v235_v45 = vpop.xlane.xlu0 %234 }
 0x171   : > { %v236_v46 = vmul.f32 0.00024414063, %v235_v45 }
 0x173   : > { %v237_v47 = vadd.f32 1e-08, %v236_v46 }
 0x175   : > { %437 = vrsqrt.f32 %v237_v47 }
 0x182   : > { %v438_v50 = vpop.eup %437 }
 0x183   : > { %v241_v51 = vmul.f32 %v438_v50, %v239_v48  ;;  %v242_v52 = vmul.f32 %v438_v50, %v240_v49 }
 0x185   : > { %251 = vperm.xlu1 %435, %v241_v51   ;;  %v245_v54 = vmul.f32 %v241_v51, %v210_v20  ;;  %v246_v56 = vmul.f32 %v242_v52, %v210_v20 }
 0x187   : > { %v247_v55 = vsub.f32 %v243_v53, %v245_v54  ;;  %v248_v58 = vsub.f32 %v244_v57, %v246_v56 }
 0x189   : > { %256 = vperm.xlu1 %435, %v242_v52   ;;  %265 = vperm.xlu0 %436, %v247_v55  }
 0x18d   : > { %270 = vperm.xlu1 %435, %v248_v58  }
 0x200   : > { %v252_v59 = vpop.permute.xlu1 %251 }
 0x201   : > { %v259_v60 = vmul.f32 %v252_v59, %v667_v0  ;;  %v260_v61 = vmul.f32 %v252_v59, %v669_v1 }
 0x204   : > { %v257_v62 = vpop.permute.xlu1 %256  ;;  %v266_v63 = vpop.permute.xlu0 %265 }
 0x205   : > { %v273_v4 = vadd.f32 %v266_v63, %v259_v60  ;;  %v274_v5 = vadd.f32 %v266_v63, %v260_v61  ;;  %v261_v6 = vmul.f32 %v257_v62, %v671_v2  ;;  %v262_v7 = vmul.f32 %v257_v62, %v673_v3 }
 0x207   : > { %277 = vst [vmem:[%s188_s22] sm:$0xff] %v273_v4  ;;  %278 = vst [vmem:[%s188_s22 + $0x8] sm:$0xff] %v274_v5 }
 0x208   : > { %v271_v0 = vpop.permute.xlu1 %270 }
 0x209   : > { %v275_v1 = vadd.f32 %v271_v0, %v261_v6  ;;  %v276_v8 = vadd.f32 %v271_v0, %v262_v7 }
 0x20b   : > { %279 = vst [vmem:[%s188_s22 + $0x10] sm:$0xff] %v275_v1  ;;  %280 = vst [vmem:[%s188_s22 + $0x18] sm:$0xff] %v276_v8 }
 0x20c   : > { %480 = shalt.err (!%p477_p10)
}
 0x20d   : > { %s481_s4 = scalar_lea.hbm %s707_s30, 512  ;;  %s485_s8 = scalar_lea.hbm %s753_s3, 1024 }
 0x20e   : > { %p482_p0 = scmp.ne.s32.totalorder %s707_s30, %s481_s4  ;;  %p486_p1 = scmp.lt.s32.totalorder %s707_s30, %s753_s3 }
 0x20f   : > { %p487_p3 = scmp.lt.s32.totalorder %s485_s8, %s481_s4 }
 0x210   : > { %p483_p2 = pnand %p482_p0, %p762_p12 }
 0x211   : > { %p488_p6 = por %p487_p3, %p486_p1 }
 0x212   : > { %p484_p9 = pneg %p483_p2 }
 0x214   : > { %p489_p11 = pnand %p488_p6, %p484_p9 }
 0x216   : > { %492 = shalt.err (!%p489_p11)
}
 0x217   : > { %s538_s20 = smov 256   ;;  %s539_s22 = smov 16  }
 0x218   : > { %386 = dma.vmem_to_hbm [thread:$0]  (%p762_p12), %s702_s26, 512, %s707_s30, %s282_s16, %s538_s20, %s538_s20, %s539_s22  }
 0x219 PF: > { %s310_s27 = sand.u32 1, %s519_s12   ;;  %p763_p13 = scmp.ne.s32.totalorder %s759_s25, 0 }
 0x21a   : > { %p764_p4 = scmp.ge.s32.totalorder %s531_s15, 2  ;;  %s311_s28 = scalar_lea.sflag [#allocation4], %s310_s27 }
 0x21c   : > { %p393_p5 = pnand %p764_p4, %p763_p13 }
 0x21e   : > { %p394_p7 = pneg %p393_p5 }
 0x220   : > { %514 = dma.done.wait (%p394_p7), %s311_s28, 512  }
 0x221   : > { %516 = vsyncadd (%p394_p7), %s311_s28, 4294966784  ;;  %p16_p8 = scmp.ge.s32.totalorder %s585_s18, 4   ;;  %s765_s12 = smov %s523_s13 }
 0x222   : > { %s766_s13 = smov %s527_s14  ;;  %s767_s14 = smov %s597_s21 }
 0x223   : > { %s768_s15 = smov %s585_s18  ;;  %18 = sbr.rel (!%p16_p8) target bundleno = 5 (0x5), region = 77 }
 0x228   :  { %316 = vsyncpa [#allocation3], 1 }
 0x229   :  { %318 = vsyncpa [#allocation3 + $0x1], 1 }
 0x22a   :  { %319 = vsyncpa [#allocation4], 1 }
 0x22b   :  { %321 = vsyncpa [#allocation4 + $0x1], 1 }

</bundles_post_ra>
